<compile_context>
chip_gen: v5e
topology: v5e:2x2
jax: 0.10.0
libtpu: 0.0.40
codegen_flags: <defaults>
</compile_context>

<pallas_src>
import jax
import jax.numpy as jnp
from jax.experimental import pallas as pl
from jax.experimental.pallas import tpu as pltpu


def add_pos_kernel(z_ref, pos_ref, o_ref):
    # z_ref:   (Bt, L)  -- tile of flattened patch embeddings (L = N*D)
    # pos_ref: (1,  L)  -- flattened pos_emb rows 1..N (resident across steps)
    # o_ref:   (Bt, L)
    o_ref[...] = z_ref[...] + pos_ref[...]


def _choose_batch_tile(B, L, itemsize):
    """Batch tile: big blocks to amortize per-step overhead, but keep >=2 grid
    steps when B allows (v7x has 2 TensorCores), keep the sublane dim a multiple
    of 8 (or equal to B), and stay well within VMEM on every generation."""
    if B < 16:
        return B  # whole batch in one block (tiny problem)
    vmem_budget = 2 * 1024 * 1024                 # per z block; double-buffered
    rows = max(8, vmem_budget // max(L * itemsize, 1))
    rows = min(rows, B // 2)                      # keep >= 2 grid steps
    rows = max(8, (rows // 8) * 8)                # sublane alignment
    return min(rows, B)


def pos_embedding(cls_token, pos_emb, z_0):
    """cls_token: (1,1,D), pos_emb: (1,N+1,D), z_0: (B,N,D) -> (B,N+1,D).

    Matches PyTorch: out = cat([cls_token.repeat(B,1,1), z_0], dim=1) + pos_emb
    """
    B, N, D = z_0.shape
    assert cls_token.shape == (1, 1, D)
    assert pos_emb.shape == (1, N + 1, D)

    dt = z_0.dtype
    cls_token = cls_token.astype(dt)
    pos_emb = pos_emb.astype(dt)

    # Lane-dense layout: flatten (N, D) -> L so the kernel's last dim is a big
    # multiple of 128 even when D is small.  For real ViT (D % 128 == 0) this is
    # pure layout plumbing; for the toy D=32 it recovers 4x on the VPU path.
    L = N * D
    z_flat = z_0.reshape(B, L)
    pos_patch = pos_emb[:, 1:, :].reshape(1, L)

    bt = _choose_batch_tile(B, L, jnp.dtype(dt).itemsize)
    grid = (pl.cdiv(B, bt),)

    out_flat = pl.pallas_call(
        add_pos_kernel,
        out_shape=jax.ShapeDtypeStruct((B, L), dt),
        grid_spec=pl.GridSpec(
            grid=grid,
            in_specs=[
                pl.BlockSpec((bt, L), lambda b: (b, 0)),  # z tile, per grid step
                pl.BlockSpec((1, L), lambda b: (0, 0)),   # pos rows 1..N, resident
            ],
            out_specs=pl.BlockSpec((bt, L), lambda b: (b, 0)),
        ),
        compiler_params=pltpu.CompilerParams(
            dimension_semantics=("parallel",),
            vmem_limit_bytes=32 * 1024 * 1024,
        ),
    )(z_flat, pos_patch)

    patches = out_flat.reshape(B, N, D)
    # Row 0 (cls + pos[0]) is batch-invariant: compute once in the wrapper and
    # broadcast, keeping the kernel's stores dense and unmasked.
    cls_row = jnp.broadcast_to(cls_token + pos_emb[:, 0:1, :], (B, 1, D))
    return jnp.concatenate([cls_row, patches], axis=1)


def reference(cls_token, pos_emb, z_0):
    B, _, D = z_0.shape
    cat = jnp.concatenate([jnp.broadcast_to(cls_token, (B, 1, D)), z_0], axis=1)
    return cat + pos_emb


if __name__ == "__main__":
    # Module config (small): emb_dim=32, num_patch_row=2, mask_ratio=0.0
    emb_dim = 32
    num_patch_row = 2
    mask_ratio = 0.0
    remain_patches = int(num_patch_row ** 2 * (1 - mask_ratio))  # 4
    batch = 2

    key = jax.random.PRNGKey(0)
    k_cls, k_pos, k_z = jax.random.split(key, 3)
    # Deterministic "randn"-style parameter init (synthetic, not a checkpoint)
    cls_token = jax.random.normal(k_cls, (1, 1, emb_dim), dtype=jnp.float32)
    pos_emb = jax.random.normal(k_pos, (1, remain_patches + 1, emb_dim), dtype=jnp.float32)
    z_0 = jax.random.normal(k_z, (batch, remain_patches, emb_dim), dtype=jnp.float32)

    out = pos_embedding(cls_token, pos_emb, z_0)
    out = jax.block_until_ready(out)

    ref = reference(cls_token, pos_emb, z_0)
    assert out.shape == (batch, remain_patches + 1, emb_dim)
    assert jnp.allclose(out, ref, atol=1e-6), "mismatch vs reference"
    print("KERNEL_OK")
</pallas_src>

<mosaic_0001>
module attributes {stable_mosaic.version = 11 : i64} {
  func.func @add_pos_kernel(%arg0: i32, %arg1: memref<2x128xf32, #tpu.memory_space<vmem>>, %arg2: memref<1x128xf32, #tpu.memory_space<vmem>>, %arg3: memref<2x128xf32, #tpu.memory_space<vmem>>) attributes {dimension_semantics = [#tpu.dimension_semantics<parallel>], iteration_bounds = array<i64: 1>, scalar_prefetch = 0 : i64, scratch_operands = 0 : i64, tpu.core_type = #tpu.core_type<tc>, window_params = [{transform_indices = @transform_0, window_bounds = array<i64: 2, 128>}, {pipeline_mode = #tpu.pipeline_mode<synchronous>, transform_indices = @transform_1, window_bounds = array<i64: 1, 128>}, {transform_indices = @transform_2, window_bounds = array<i64: 2, 128>}]} {
    %c0 = arith.constant 0 : index
    %c0_0 = arith.constant 0 : index
    %0 = vector.load %arg1[%c0, %c0_0] : memref<2x128xf32, #tpu.memory_space<vmem>>, vector<2x128xf32>
    %c0_1 = arith.constant 0 : index
    %c0_2 = arith.constant 0 : index
    %1 = vector.load %arg2[%c0_1, %c0_2] : memref<1x128xf32, #tpu.memory_space<vmem>>, vector<1x128xf32>
    %2 = vector.broadcast %1 : vector<1x128xf32> to vector<2x128xf32>
    %3 = arith.addf %0, %2 : vector<2x128xf32>
    %c0_3 = arith.constant 0 : index
    %c0_4 = arith.constant 0 : index
    %4 = vector.load %arg3[%c0_3, %c0_4] : memref<2x128xf32, #tpu.memory_space<vmem>>, vector<2x128xf32>
    tpu.vector_store %arg3[%c0_3, %c0_4], %3 {strides = array<i32>} : memref<2x128xf32, #tpu.memory_space<vmem>>, vector<2x128xf32>,
    return
  }
  func.func @transform_0(%arg0: i32) -> (i32, i32) {
    %c0_i32 = arith.constant 0 : i32
    %c0_i32_0 = arith.constant 0 : i32
    return %arg0, %c0_i32 : i32, i32
  }
  func.func @transform_1(%arg0: i32) -> (i32, i32) {
    %c0_i32 = arith.constant 0 : i32
    %c0_i32_0 = arith.constant 0 : i32
    %c0_i32_1 = arith.constant 0 : i32
    return %c0_i32, %c0_i32_0 : i32, i32
  }
  func.func @transform_2(%arg0: i32) -> (i32, i32) {
    %c0_i32 = arith.constant 0 : i32
    %c0_i32_0 = arith.constant 0 : i32
    return %arg0, %c0_i32 : i32, i32
  }
}

</mosaic_0001>

<bundles_post_ra>
// kernel: tpu_custom_call.1
= control target key start
LH: loop header
LB: loop body
LE: loop exit
PB: predicated region body
PF: predicated region fallthrough
CT: control target
= control target key end

     0   :  { %7 = vsyncpa [#allocation3], 0  ;;  %s174_s0 = inlined_call_operand.hbm [shape: f32[2,128], index: 0, kind: input, shape index: {}]   ;;  %s175_s1 = inlined_call_operand.hbm [shape: f32[1,128], index: 1, kind: input, shape index: {}]   ;;  %s176_s2 = inlined_call_operand.hbm [shape: f32[2,128], index: 2, kind: output, shape index: {}]  }
   0x1   :  { %8 = vsyncpa [#allocation6], 0 }
   0x2   :  { %9 = vsyncpa [#allocation4], 0  ;;  %s15_s11 = sshll.u32 %s174_s0, 4  ;;  %s147_s12 = smov [#allocation2]   ;;  %s16_s11 = int_to_ptr.hbm [resolvable:$true] %s15_s11 }
   0x3   :  { %s17_s13 = sshll.u32 %s147_s12, 4  ;;  %s26_s16 = sshll.u32 %s175_s1, 4  ;;  %s18_s13 = int_to_ptr.vmem [resolvable:$true] %s17_s13  ;;  %s27_s16 = int_to_ptr.hbm [resolvable:$true] %s26_s16 }
   0x4   :  { %20 = dma.hbm_to_vmem [thread:$0]  %s16_s11, 32, %s18_s13, [#allocation3]  }
   0x5   :  { %s148_s17 = smov [#allocation5]  }
   0x6   :  { %s28_s18 = sshll.u32 %s148_s17, 4  ;;  %s29_s18 = int_to_ptr.vmem [resolvable:$true] %s28_s18 }
   0x7   :  { %31 = dma.hbm_to_vmem [thread:$0]  %s27_s16, 16, %s29_s18, [#allocation6]  }
   0x8   :  { %141 = dma.done.wait [#allocation3], 32  }
   0x9   :  { %142 = vsyncadd [#allocation3], 4294967264 }
   0xa   :  { %143 = dma.done.wait [#allocation6], 16  }
   0xb   :  { %144 = vsyncadd [#allocation6], 4294967280  ;;  %s149_s19 = smov [#allocation7]   ;;  %s54_s22 = sshll.u32 %s176_s2, 4  ;;  %v40_v0 = vld [vmem:[#allocation2] sm:$0x3]  ;;  %s55_s22 = int_to_ptr.hbm [resolvable:$true] %s54_s22 }
   0xc   :  { %s52_s0 = sshll.u32 %s149_s19, 4  ;;  %v68_v1 = vld [vmem:[#allocation5] ss:$0 sm:$0xff]  ;;  %s53_s0 = int_to_ptr.vmem [resolvable:$true] %s52_s0 }
   0xd   :  { %v45_v2 = vadd.f32 %v68_v1, %v40_v0 }
   0xf   :  { %46 = vst [vmem:[#allocation7] sm:$0x3] %v45_v2 }
  0x10   :  { %57 = dma.vmem_to_hbm [thread:$0]  %s53_s0, 32, %s55_s22, [#allocation4]  }
  0x11   :  { %145 = dma.done.wait [#allocation4], 32  }
  0x12   :  { %146 = vsyncadd [#allocation4], 4294967264 }
  0x13   :  { %62 = vsyncpa [#allocation3], 1 }
  0x14   :  { %63 = vsyncpa [#allocation6], 1 }
  0x15   :  { %64 = vsyncpa [#allocation4], 1 }

</bundles_post_ra>
